<compile_context>
chip_gen: v5e
topology: v5e:2x2
jax: 0.10.0
libtpu: 0.0.40
codegen_flags: <defaults>
</compile_context>

<pallas_src>
import jax
import jax.numpy as jnp
from jax import lax
from jax.experimental import pallas as pl
from jax.experimental.pallas import tpu as pltpu


# ----------------------------------------------------------------------------
# Pallas kernel: one grid step == MB images, each of shape (C, N)
# ----------------------------------------------------------------------------
def self_attention_kernel(gamma_ref,   # SMEM (1, 1)     f32 scalar gamma
                          x_ref,       # VMEM (MB, C, N) io dtype, channels-first
                          wcat_ref,    # VMEM (Ctot, C)  compute dtype, rows [Wq_p; Wk_p; Wv]
                          bcat_ref,    # VMEM (Ctot, 1)  f32
                          o_ref):      # VMEM (MB, C, N) io dtype
    mb, c, n = x_ref.shape
    ctot = wcat_ref.shape[0]
    cqp = (ctot - c) // 2
    cd = wcat_ref.dtype                         # MXU operand dtype (bf16 or f32)

    gamma = gamma_ref[0, 0]
    w = wcat_ref[...]                           # (Ctot, C)  resident weight
    bias = bcat_ref[...]                        # (Ctot, 1)  f32
    ones_row = jnp.ones((1, n), jnp.float32)    # for the rank-1 MXU row-sum

    nn2 = (((1,), (0,)), ((), ()))   # A[m,k] @ B[k,n]
    tn2 = (((0,), (0,)), ((), ()))   # contract first dims of both (transposed LHS)
    nt2 = (((1,), (1,)), ((), ()))   # contract last dims of both (transposed RHS)

    # Per-image 2-D matmuls: the MXU sees the same shapes a batched-3D dot would be unrolled
    # into, and every dot pattern below is a standard flash-attention one.  MB is small
    # (VMEM-capped), so the static unroll is cheap.
    for img in range(mb):
        x_f32 = x_ref[img].astype(jnp.float32)                           # (C, N)

        # Fused q/k/v 1x1 convolutions: one (Ctot, C) x (C, N) matmul, f32 accum + f32 bias.
        qkv = lax.dot_general(w, x_f32.astype(cd), nn2,
                              preferred_element_type=jnp.float32) + bias  # (Ctot, N)
        q = qkv[:cqp]              # (Cqp, N)  padded channels are exactly zero
        k = qkv[cqp:2 * cqp]       # (Cqp, N)
        v = qkv[2 * cqp:]          # (C,  N)

        # energy[i, j] = q[:, i] . k[:, j]  == torch.bmm(query.permute(0,2,1), key)
        energy = lax.dot_general(q.astype(cd), k.astype(cd), tn2,
                                 preferred_element_type=jnp.float32)      # (N, N)

        # Numerically stable softmax over j, in f32 (EUP exp).
        energy = energy - jnp.max(energy, axis=-1, keepdims=True)
        p = jnp.exp(energy)                                               # (N, N)

        # Row sums directly in the (1, N_i) orientation (rank-1 MXU reduction), folded into V:
        # out[c, j] = sum_i (v[c, i] / den[i]) * p[i, j].  Saves the N^2 VPU multiply.
        den_t = lax.dot_general(ones_row, p, nt2,
                                preferred_element_type=jnp.float32)       # (1, N)
        # approx=True uses the EUP (~1e-3 rel); switch to exact if tighter accuracy is needed.
        v_scaled = v * pl.reciprocal(den_t, approx=True)                  # (C, N)

        # out[c, j] = sum_i v[c, i] * attn[i, j]  == torch.bmm(value, attention)  (no permute,
        # exactly as in the module).
        out = lax.dot_general(v_scaled.astype(cd), p.astype(cd), nn2,
                              preferred_element_type=jnp.float32)         # (C, N)

        o_ref[img] = (gamma * out + x_f32).astype(o_ref.dtype)


# ----------------------------------------------------------------------------
# Wrapper helpers: chip-aware VMEM limit and VMEM-aware block size
# ----------------------------------------------------------------------------
def _vmem_limit_bytes():
    try:
        cap = int(pltpu.get_tpu_info().vmem_capacity_bytes)
    except Exception:
        cap = 64 * 1024 * 1024            # conservative fallback (v7x physical VMEM)
    # ~48 MiB on v7x (64 MiB physical), ~96 MiB on v5e/v6e (128 MiB physical).
    return min((cap * 3) // 4, 112 * 1024 * 1024)


def _pick_block_m(M, C, N, Ctot, vmem_limit, block_m_max):
    # Per-image attention temporaries: f32 energy + f32 p + bf16 MXU copies ~ 12*N^2 bytes,
    # plus qkv / v_scaled / out / x slices.  Keep all per-step temporaries under ~half the
    # VMEM limit so the double-buffered HBM<->VMEM I/O blocks still fit.
    per_image = 12 * N * N + 4 * N * (2 * Ctot + 4 * C)
    budget = max(vmem_limit // 2, 2 * 1024 * 1024)
    mb = max(1, min(block_m_max, budget // per_image))
    if M >= 2:
        # Guarantee >= 2 grid steps: shards across v7x's two TensorCores and gives the
        # software pipeline something to overlap.
        mb = min(mb, (M + 1) // 2)
    # TODO(synk): for very large N (e.g. 64x64 maps) even MB=1 overflows VMEM; that regime
    # needs a KV-tiled online-softmax grid axis.
    return max(1, int(mb))


# ----------------------------------------------------------------------------
# Wrapper: raw reshapes (no HBM transposes), padding, pallas_call
# ----------------------------------------------------------------------------
def self_attention_pallas(x5, wq, bq, wk, bk, wv, bv, gamma, *,
                          block_m=8, compute_dtype=jnp.bfloat16,
                          io_dtype=jnp.float32):
    """x5: (B, C, T, W, H).  wq/wk: (C//8, C), wv: (C, C), 1-D biases, gamma: (1,).

    compute_dtype: dtype of the MXU operands (bf16 on v5e/v6e/v7x, f32 for exact checks).
    io_dtype:      dtype of the HBM-facing x / output blocks (bf16 halves HBM bytes in the
                   memory-bound regime; residual then sees bf16 x).
    Softmax / accumulation / residual math is always f32 inside the kernel.
    """
    B, C, T, W, H = x5.shape
    N = W * H
    Cq = wq.shape[0]

    # torch: x = x.view(-1, C, W, H) -- a raw row-major reshape, reproduced exactly.
    # Data stays channels-first (M, C, N); no HBM transpose pass.
    x_flat = jnp.reshape(x5, (-1, C, N)).astype(io_dtype)
    M = x_flat.shape[0]

    vmem_limit = _vmem_limit_bytes()

    # Zero-pad Cq (= C//8, often tiny) up to a sublane-friendly multiple of 8.  Padded q/k
    # channels (weights AND biases zero) contribute exactly 0 to the energy.
    Cqp = max(8, ((Cq + 7) // 8) * 8)
    Ctot = 2 * Cqp + C

    MB = _pick_block_m(M, C, N, Ctot, vmem_limit, block_m)
    grid_m = -(-M // MB)
    M_pad = grid_m * MB
    if M_pad != M:
        # TODO(synk): padded tail images run a (discarded) uniform softmax; mask the last
        # grid step if M_pad >> M ever matters.
        x_flat = jnp.pad(x_flat, ((0, M_pad - M), (0, 0), (0, 0)))

    # Concatenated 1x1-conv weight / bias: rows [Wq_pad ; Wk_pad ; Wv].
    wcat = jnp.zeros((Ctot, C), jnp.float32)
    wcat = wcat.at[:Cq].set(wq)
    wcat = wcat.at[Cqp:Cqp + Cq].set(wk)
    wcat = wcat.at[2 * Cqp:].set(wv)
    bcat = jnp.zeros((Ctot, 1), jnp.float32)
    bcat = bcat.at[:Cq, 0].set(bq)
    bcat = bcat.at[Cqp:Cqp + Cq, 0].set(bk)
    bcat = bcat.at[2 * Cqp:, 0].set(bv)

    gamma2d = jnp.reshape(gamma.astype(jnp.float32), (1, 1))

    io_bytes = jnp.dtype(io_dtype).itemsize
    w_bytes = jnp.dtype(compute_dtype).itemsize
    cost = pl.CostEstimate(
        flops=int(2 * M_pad * (Ctot * C * N + (Cqp + 1 + C) * N * N)),
        transcendentals=int(M_pad * N * N),
        bytes_accessed=int(2 * M_pad * C * N * io_bytes
                           + Ctot * C * w_bytes + Ctot * 4 + 4),
    )

    out_flat = pl.pallas_call(
        self_attention_kernel,
        out_shape=jax.ShapeDtypeStruct((M_pad, C, N), io_dtype),
        grid=(grid_m,),
        in_specs=[
            pl.BlockSpec(memory_space=pltpu.MemorySpace.SMEM),    # gamma (scalar)
            # NOTE: for deployment-scale SAGAN (W*H >= 128) the last dim is lane-dense; for
            # tiny demo maps (N=64) a (MB, C*N) lane-dense presentation would need an
            # in-kernel relayout, so the 3-D block is kept.
            pl.BlockSpec((MB, C, N), lambda m: (m, 0, 0)),        # x block (channels-first)
            # Constant index_maps -> fused weight/bias stay resident (fetched once).
            pl.BlockSpec((Ctot, C), lambda m: (0, 0)),            # [Wq;Wk;Wv]
            pl.BlockSpec((Ctot, 1), lambda m: (0, 0)),            # [bq;bk;bv]
        ],
        out_specs=pl.BlockSpec((MB, C, N), lambda m: (m, 0, 0)),
        compiler_params=pltpu.CompilerParams(
            # Disjoint output blocks -> legally parallel (v7x megacore sharding).
            dimension_semantics=("parallel",),
            vmem_limit_bytes=int(vmem_limit),
        ),
        cost_estimate=cost,
    )(gamma2d, x_flat, wcat.astype(compute_dtype), bcat)

    out_flat = out_flat[:M]
    # torch: out.view(B, C, T, W, H) -- inverse raw reshape.
    return jnp.reshape(out_flat, (B, C, T, W, H)).astype(x5.dtype)


# ----------------------------------------------------------------------------
# Plain-JAX reference mirroring the PyTorch forward exactly.
# ----------------------------------------------------------------------------
def self_attention_ref(x5, wq, bq, wk, bk, wv, bv, gamma, *,
                       compute_dtype=jnp.float32):
    B, C, T, W, H = x5.shape
    N = W * H
    cd = compute_dtype

    xf = jnp.reshape(x5, (-1, C, N)).astype(jnp.float32)
    xc = xf.astype(cd)

    q = jnp.einsum('oc,mcn->mon', wq.astype(cd), xc,
                   preferred_element_type=jnp.float32) + bq[None, :, None]
    k = jnp.einsum('oc,mcn->mon', wk.astype(cd), xc,
                   preferred_element_type=jnp.float32) + bk[None, :, None]
    v = jnp.einsum('oc,mcn->mon', wv.astype(cd), xc,
                   preferred_element_type=jnp.float32) + bv[None, :, None]

    energy = jnp.einsum('mci,mcj->mij', q.astype(cd), k.astype(cd),
                        preferred_element_type=jnp.float32)           # (M, N, N)
    attn = jax.nn.softmax(energy, axis=-1)
    out = jnp.einsum('mci,mij->mcj', v.astype(cd), attn.astype(cd),
                     preferred_element_type=jnp.float32)              # (M, C, N)

    out5 = jnp.reshape(out, (B, C, T, W, H))
    return gamma * out5 + x5


# ----------------------------------------------------------------------------
# Deterministic parameter init (shapes from the module's __init__)
# ----------------------------------------------------------------------------
def spectral_normalize(w2d, n_iter=30):
    """Divide a (out, in) weight by its largest singular value, matching
    torch.nn.utils.spectral_norm's forward-time reparametrization."""
    u = jnp.ones((w2d.shape[0],), jnp.float32)
    u = u / jnp.linalg.norm(u)
    for _ in range(n_iter):
        v = w2d.T @ u
        v = v / (jnp.linalg.norm(v) + 1e-12)
        u = w2d @ v
        u = u / (jnp.linalg.norm(u) + 1e-12)
    sigma = u @ (w2d @ v)
    return w2d / sigma


if __name__ == "__main__":
    B, C, T, W, H = 2, 16, 2, 8, 8          # in_dim = 16  ->  C//8 = 2
    Cq = C // 8

    key = jax.random.PRNGKey(0)
    kx, kq, kk, kv, kbq, kbk, kbv = jax.random.split(key, 7)

    x = jax.random.normal(kx, (B, C, T, W, H), dtype=jnp.float32)

    # Conv2d(kernel_size=1) weights are (out, in, 1, 1); stored squeezed.
    # TODO(synk): spectral_norm's power iteration is a host-side weight reparametrization,
    # applied here before the kernel (not inside it).
    wq = spectral_normalize(jax.random.normal(kq, (Cq, C), jnp.float32) * 0.2)
    wk = spectral_normalize(jax.random.normal(kk, (Cq, C), jnp.float32) * 0.2)
    wv = spectral_normalize(jax.random.normal(kv, (C, C), jnp.float32) * 0.2)
    bq = jax.random.normal(kbq, (Cq,), jnp.float32) * 0.1
    bk = jax.random.normal(kbk, (Cq,), jnp.float32) * 0.1
    bv = jax.random.normal(kbv, (C,), jnp.float32) * 0.1
    # gamma is zero-initialized in the module; use a nonzero value so the attention path
    # actually contributes to the check.
    gamma = jnp.array([0.5], dtype=jnp.float32)

    ref32 = self_attention_ref(x, wq, bq, wk, bk, wv, bv, gamma)

    # --- exact f32 path ------------------------------------------------------
    out32 = self_attention_pallas(x, wq, bq, wk, bk, wv, bv, gamma,
                                  compute_dtype=jnp.float32, io_dtype=jnp.float32)
    jax.block_until_ready(out32)
    assert out32.shape == (B, C, T, W, H)
    err32 = float(jnp.max(jnp.abs(out32 - ref32)))
    assert err32 < 5e-3, f"f32 max abs err {err32}"

    # --- bf16 MXU-operand path (f32 accumulation / softmax / residual) -------
    outbf = self_attention_pallas(x, wq, bq, wk, bk, wv, bv, gamma,
                                  compute_dtype=jnp.bfloat16, io_dtype=jnp.float32)
    jax.block_until_ready(outbf)
    errbf = float(jnp.max(jnp.abs(outbf - ref32)))
    assert errbf < 2e-2, f"bf16 max abs err {errbf}"

    # --- bf16 HBM I/O path (halves input/output HBM bytes) -------------------
    outio = self_attention_pallas(x, wq, bq, wk, bk, wv, bv, gamma,
                                  compute_dtype=jnp.bfloat16, io_dtype=jnp.bfloat16)
    jax.block_until_ready(outio)
    errio = float(jnp.max(jnp.abs(outio.astype(jnp.float32) - ref32)))
    assert errio < 6e-2, f"bf16-io max abs err {errio}"

    print("KERNEL_OK")
</pallas_src>

<mosaic_0001>
module attributes {stable_mosaic.version = 11 : i64} {
  func.func @self_attention_kernel(%arg0: i32, %arg1: memref<1x1xf32, #tpu.memory_space<smem>>, %arg2: memref<2x16x64xf32, #tpu.memory_space<vmem>>, %arg3: memref<32x16xf32, #tpu.memory_space<vmem>>, %arg4: memref<32x1xf32, #tpu.memory_space<vmem>>, %arg5: memref<2x16x64xf32, #tpu.memory_space<vmem>>) attributes {dimension_semantics = [#tpu.dimension_semantics<parallel>], iteration_bounds = array<i64: 2>, scalar_prefetch = 0 : i64, scratch_operands = 0 : i64, tpu.core_type = #tpu.core_type<tc>, window_params = [{transform_indices = @transform_0, window_bounds = array<i64: 1, 1>}, {transform_indices = @transform_1, window_bounds = array<i64: 2, 16, 64>}, {pipeline_mode = #tpu.pipeline_mode<synchronous>, transform_indices = @transform_2, window_bounds = array<i64: 32, 16>}, {pipeline_mode = #tpu.pipeline_mode<synchronous>, transform_indices = @transform_3, window_bounds = array<i64: 32, 1>}, {transform_indices = @transform_4, window_bounds = array<i64: 2, 16, 64>}]} {
    %c0 = arith.constant 0 : index
    %c0_0 = arith.constant 0 : index
    %0 = memref.load %arg1[%c0, %c0_0] : memref<1x1xf32, #tpu.memory_space<smem>>
    %c0_1 = arith.constant 0 : index
    %c0_2 = arith.constant 0 : index
    %1 = vector.load %arg3[%c0_1, %c0_2] : memref<32x16xf32, #tpu.memory_space<vmem>>, vector<32x16xf32>
    %c0_3 = arith.constant 0 : index
    %c0_4 = arith.constant 0 : index
    %2 = vector.load %arg4[%c0_3, %c0_4] : memref<32x1xf32, #tpu.memory_space<vmem>>, vector<32x1xf32>
    %cst = arith.constant 1.000000e+00 : f32
    %3 = vector.broadcast %cst : f32 to vector<1x64xf32>
    %c0_5 = arith.constant 0 : index
    %c0_6 = arith.constant 0 : index
    %c0_7 = arith.constant 0 : index
    %4 = vector.load %arg2[%c0_5, %c0_6, %c0_7] : memref<2x16x64xf32, #tpu.memory_space<vmem>>, vector<1x16x64xf32>
    %5 = vector.shape_cast %4 : vector<1x16x64xf32> to vector<16x64xf32>
    %cst_8 = arith.constant dense<0.000000e+00> : vector<32x64xf32>
    %6 = tpu.matmul %1, %5, %cst_8 {dimension_numbers = #tpu.dot_dimension_numbers<[1], [0], [0], [1], [0, 0, 1, 1], [], []>} : vector<32x16xf32>, vector<16x64xf32>, vector<32x64xf32> -> vector<32x64xf32>
    %7 = vector.broadcast %2 : vector<32x1xf32> to vector<32x64xf32>
    %8 = arith.addf %6, %7 : vector<32x64xf32>
    %9 = vector.extract_strided_slice %8 {offsets = [0, 0], sizes = [8, 64], strides = [1, 1]} : vector<32x64xf32> to vector<8x64xf32>
    %10 = vector.extract_strided_slice %8 {offsets = [8, 0], sizes = [8, 64], strides = [1, 1]} : vector<32x64xf32> to vector<8x64xf32>
    %11 = vector.extract_strided_slice %8 {offsets = [16, 0], sizes = [16, 64], strides = [1, 1]} : vector<32x64xf32> to vector<16x64xf32>
    %cst_9 = arith.constant dense<0.000000e+00> : vector<64x64xf32>
    %12 = tpu.matmul %9, %10, %cst_9 {dimension_numbers = #tpu.dot_dimension_numbers<[0], [0], [1], [1], [0, 1, 1, 1], [], []>} : vector<8x64xf32>, vector<8x64xf32>, vector<64x64xf32> -> vector<64x64xf32>
    %cst_10 = arith.constant dense<0xFF800000> : vector<64xf32>
    %13 = vector.multi_reduction <maximumf>, %12, %cst_10 [1] : vector<64x64xf32> to vector<64xf32>
    %14 = vector.shape_cast %13 : vector<64xf32> to vector<64x1xf32>
    %15 = vector.broadcast %14 : vector<64x1xf32> to vector<64x64xf32>
    %16 = arith.subf %12, %15 : vector<64x64xf32>
    %17 = math.exp %16 : vector<64x64xf32>
    %cst_11 = arith.constant dense<0.000000e+00> : vector<1x64xf32>
    %18 = tpu.matmul %3, %17, %cst_11 {dimension_numbers = #tpu.dot_dimension_numbers<[1], [1], [0], [0], [0, 0, 1, 0], [], []>} : vector<1x64xf32>, vector<64x64xf32>, vector<1x64xf32> -> vector<1x64xf32>
    %19 = tpu.reciprocal %18 {approx = true} : vector<1x64xf32> -> vector<1x64xf32>
    %20 = vector.broadcast %19 : vector<1x64xf32> to vector<16x64xf32>
    %21 = arith.mulf %11, %20 : vector<16x64xf32>
    %cst_12 = arith.constant dense<0.000000e+00> : vector<16x64xf32>
    %22 = tpu.matmul %21, %17, %cst_12 {dimension_numbers = #tpu.dot_dimension_numbers<[1], [0], [0], [1], [0, 0, 1, 1], [], []>} : vector<16x64xf32>, vector<64x64xf32>, vector<16x64xf32> -> vector<16x64xf32>
    %23 = vector.broadcast %0 : f32 to vector<16x64xf32>
    %24 = arith.mulf %23, %22 : vector<16x64xf32>
    %25 = arith.addf %24, %5 : vector<16x64xf32>
    %c0_13 = arith.constant 0 : index
    %c0_14 = arith.constant 0 : index
    %c0_15 = arith.constant 0 : index
    %26 = vector.load %arg5[%c0_13, %c0_14, %c0_15] : memref<2x16x64xf32, #tpu.memory_space<vmem>>, vector<1x16x64xf32>
    %27 = vector.shape_cast %26 : vector<1x16x64xf32> to vector<16x64xf32>
    %28 = vector.shape_cast %25 : vector<16x64xf32> to vector<1x16x64xf32>
    tpu.vector_store %arg5[%c0_13, %c0_14, %c0_15], %28 {strides = array<i32>} : memref<2x16x64xf32, #tpu.memory_space<vmem>>, vector<1x16x64xf32>,
    %c1 = arith.constant 1 : index
    %c0_16 = arith.constant 0 : index
    %c0_17 = arith.constant 0 : index
    %29 = vector.load %arg2[%c1, %c0_16, %c0_17] : memref<2x16x64xf32, #tpu.memory_space<vmem>>, vector<1x16x64xf32>
    %30 = vector.shape_cast %29 : vector<1x16x64xf32> to vector<16x64xf32>
    %cst_18 = arith.constant dense<0.000000e+00> : vector<32x64xf32>
    %31 = tpu.matmul %1, %30, %cst_18 {dimension_numbers = #tpu.dot_dimension_numbers<[1], [0], [0], [1], [0, 0, 1, 1], [], []>} : vector<32x16xf32>, vector<16x64xf32>, vector<32x64xf32> -> vector<32x64xf32>
    %32 = vector.broadcast %2 : vector<32x1xf32> to vector<32x64xf32>
    %33 = arith.addf %31, %32 : vector<32x64xf32>
    %34 = vector.extract_strided_slice %33 {offsets = [0, 0], sizes = [8, 64], strides = [1, 1]} : vector<32x64xf32> to vector<8x64xf32>
    %35 = vector.extract_strided_slice %33 {offsets = [8, 0], sizes = [8, 64], strides = [1, 1]} : vector<32x64xf32> to vector<8x64xf32>
    %36 = vector.extract_strided_slice %33 {offsets = [16, 0], sizes = [16, 64], strides = [1, 1]} : vector<32x64xf32> to vector<16x64xf32>
    %cst_19 = arith.constant dense<0.000000e+00> : vector<64x64xf32>
    %37 = tpu.matmul %34, %35, %cst_19 {dimension_numbers = #tpu.dot_dimension_numbers<[0], [0], [1], [1], [0, 1, 1, 1], [], []>} : vector<8x64xf32>, vector<8x64xf32>, vector<64x64xf32> -> vector<64x64xf32>
    %cst_20 = arith.constant dense<0xFF800000> : vector<64xf32>
    %38 = vector.multi_reduction <maximumf>, %37, %cst_20 [1] : vector<64x64xf32> to vector<64xf32>
    %39 = vector.shape_cast %38 : vector<64xf32> to vector<64x1xf32>
    %40 = vector.broadcast %39 : vector<64x1xf32> to vector<64x64xf32>
    %41 = arith.subf %37, %40 : vector<64x64xf32>
    %42 = math.exp %41 : vector<64x64xf32>
    %cst_21 = arith.constant dense<0.000000e+00> : vector<1x64xf32>
    %43 = tpu.matmul %3, %42, %cst_21 {dimension_numbers = #tpu.dot_dimension_numbers<[1], [1], [0], [0], [0, 0, 1, 0], [], []>} : vector<1x64xf32>, vector<64x64xf32>, vector<1x64xf32> -> vector<1x64xf32>
    %44 = tpu.reciprocal %43 {approx = true} : vector<1x64xf32> -> vector<1x64xf32>
    %45 = vector.broadcast %44 : vector<1x64xf32> to vector<16x64xf32>
    %46 = arith.mulf %36, %45 : vector<16x64xf32>
    %cst_22 = arith.constant dense<0.000000e+00> : vector<16x64xf32>
    %47 = tpu.matmul %46, %42, %cst_22 {dimension_numbers = #tpu.dot_dimension_numbers<[1], [0], [0], [1], [0, 0, 1, 1], [], []>} : vector<16x64xf32>, vector<64x64xf32>, vector<16x64xf32> -> vector<16x64xf32>
    %48 = vector.broadcast %0 : f32 to vector<16x64xf32>
    %49 = arith.mulf %48, %47 : vector<16x64xf32>
    %50 = arith.addf %49, %30 : vector<16x64xf32>
    %c1_23 = arith.constant 1 : index
    %c0_24 = arith.constant 0 : index
    %c0_25 = arith.constant 0 : index
    %51 = vector.load %arg5[%c1_23, %c0_24, %c0_25] : memref<2x16x64xf32, #tpu.memory_space<vmem>>, vector<1x16x64xf32>
    %52 = vector.shape_cast %51 : vector<1x16x64xf32> to vector<16x64xf32>
    %53 = vector.shape_cast %50 : vector<16x64xf32> to vector<1x16x64xf32>
    tpu.vector_store %arg5[%c1_23, %c0_24, %c0_25], %53 {strides = array<i32>} : memref<2x16x64xf32, #tpu.memory_space<vmem>>, vector<1x16x64xf32>,
    return
  }
  func.func @transform_0(%arg0: i32) -> (i32, i32) {
    %c0_i32 = arith.constant 0 : i32
    %c0_i32_0 = arith.constant 0 : i32
    %c0_i32_1 = arith.constant 0 : i32
    return %c0_i32, %c0_i32_0 : i32, i32
  }
  func.func @transform_1(%arg0: i32) -> (i32, i32, i32) {
    %c0_i32 = arith.constant 0 : i32
    %c0_i32_0 = arith.constant 0 : i32
    %c0_i32_1 = arith.constant 0 : i32
    return %arg0, %c0_i32, %c0_i32_0 : i32, i32, i32
  }
  func.func @transform_2(%arg0: i32) -> (i32, i32) {
    %c0_i32 = arith.constant 0 : i32
    %c0_i32_0 = arith.constant 0 : i32
    %c0_i32_1 = arith.constant 0 : i32
    return %c0_i32, %c0_i32_0 : i32, i32
  }
  func.func @transform_3(%arg0: i32) -> (i32, i32) {
    %c0_i32 = arith.constant 0 : i32
    %c0_i32_0 = arith.constant 0 : i32
    %c0_i32_1 = arith.constant 0 : i32
    return %c0_i32, %c0_i32_0 : i32, i32
  }
  func.func @transform_4(%arg0: i32) -> (i32, i32, i32) {
    %c0_i32 = arith.constant 0 : i32
    %c0_i32_0 = arith.constant 0 : i32
    %c0_i32_1 = arith.constant 0 : i32
    return %arg0, %c0_i32, %c0_i32_0 : i32, i32, i32
  }
}

</mosaic_0001>

<bundles_post_ra>
// kernel: tpu_custom_call.1
= control target key start
LH: loop header
LB: loop body
LE: loop exit
PB: predicated region body
PF: predicated region fallthrough
CT: control target
= control target key end

     0   :  { %s1366_s0 = inlined_call_operand.<no memory space> [shape: f32[1,1], index: 0, kind: input, shape index: {}]   ;;  %s1367_s1 = inlined_call_operand.vmem [shape: f32[4,16,64], index: 1, kind: input, shape index: {}]   ;;  %s1368_s2 = inlined_call_operand.vmem [shape: f32[32,16], index: 2, kind: input, shape index: {}]   ;;  %s1369_s3 = inlined_call_operand.vmem [shape: f32[32,1], index: 3, kind: input, shape index: {}]   ;;  %s1370_s4 = inlined_call_operand.hbm [shape: f32[4,16,64], index: 4, kind: output, shape index: {}]  }
   0x1   :  { %9 = sst [smem:[#allocation2]] %s1366_s0 }
   0x2   :  { %10 = vsyncpa [#allocation4], 0 }
   0x3   :  { %12 = vsyncpa [#allocation4 + $0x1], 0  ;;  %s1099_s17 = smov 0   ;;  %s1101_s18 = smov 0  }
   0x4   :  { %s1103_s19 = smov 0   ;;  %s1105_s20 = smov 0  }
   0x5 LB: > { %s1120_s0 = sadd.s32 4294967295, %s1065_s20   ;;  %s850_s21 = sadd.s32 4294967294, %s1065_s20   ;;  %s1065_s20 = sphi %s1105_s20, %s1376_s20   ;;  %s1061_s19 = sphi %s1103_s19, %s1375_s19   ;;  %s1057_s18 = sphi %s1101_s18, %s1374_s18   ;;  %s1053_s17 = sphi %s1099_s17, %s1373_s17  }
   0x6   : > { %s1124_s22 = sadd.s32 1, %s1065_s20   ;;  %s114_s23 = sadd.s32 1, %s1061_s19 }
   0x7   : > { %s111_s24 = ssub.s32 %s1065_s20, %s1124_s22  ;;  %p124_p0 = scmp.ne.s32.totalorder %s1061_s19, %s1057_s18 }
   0x8   : > { %p112_p1 = scmp.eq.s32.totalorder %s111_s24, 0  ;;  %p125_p2 = scmp.eq.s32.totalorder %s1120_s0, 1 }
   0x9   : > { %p130_p3 = scmp.ne.s32.totalorder %s1057_s18, %s1053_s17  ;;  %p131_p4 = scmp.eq.s32.totalorder %s850_s21, 1 }
   0xa   : > { %s1135_s25 = scalar_select %p112_p1, %s1061_s19, %s114_s23  }
   0xb   : > { %p1137_p5 = por %p125_p2, %p124_p0  ;;  %p1141_p6 = por %p131_p4, %p130_p3 }
   0xc   : > { %p853_p7 = scmp.ge.s32.totalorder %s1065_s20, 1  ;;  %p168_p8 = scmp.lt.s32.totalorder %s1065_s20, 3 }
   0xe   : > { %p169_p9 = pnand %p853_p7, %p168_p8 }
   0xf   : > { %s855_s28 = sshll.u32 (!%p169_p9), %s1120_s0, 1  ;;  %s192_s6 = sand.u32 (!%p169_p9), 1, %s1057_s18  }
  0x10   : > { %172 = sbr.rel (%p169_p9) target bundleno = 1749 (0x6d5), region = 36  ;;  %p196_p10 = scmp.lt.s32.totalorder (!%p169_p9), %s855_s28, 3 }
  0x11   : > { %s854_s7 = sshll.u32 (!%p169_p9), %s192_s6, 5  ;;  %s916_s9 = sshll.u32 (!%p169_p9), %s1120_s0, 5 }
  0x12   : > { %s784_s12 = scalar_lea.hbm (!%p169_p9), %s1370_s4, %s916_s9  ;;  %s772_s0 = scalar_lea.sflag (!%p169_p9), [#allocation4], %s192_s6 }
  0x13   : > { %s787_s14 = sshll.u32 (!%p169_p9), %s784_s12, 4  ;;  %s1023_s24 = scalar_lea.hbm (!%p169_p9), %s1370_s4, 64  ;;  %s788_s14 = int_to_ptr.hbm [resolvable:$true] %s787_s14 }
  0x14   : > { %s1017_s15 = sshra.s32 (!%p169_p9), %s788_s14, 4  ;;  %s1018_s15 = int_to_ptr.hbm [resolvable:$true] %s1017_s15 }
  0x15   : > { %v208_v0 = vld [vmem:[%s1369_s3] sm:$0xff]  ;;  %v1067_v1 = vmov 0   ;;  %s1378_s28 = smov (!%p196_p10, %s855_s28), 3  ;;  %vm234_vm0 = vcmask 130048   ;;  %v1172_v5 = vld [vmem:[%s1368_s2 + $0x8] sm:$0xff]  ;;  %vm308_vm1 = vcmask 64512   ;;  %p1024_p0 = scmp.lt.s32.totalorder %s1018_s15, %s1370_s4 }
  0x16   : > { %965 = vset.pattern.permute.xlu0 %v1067_v1  ;;  %966 = vset.pattern.permute.xlu2 %v1067_v1  ;;  %s914_s5 = sshll.u32 %s1378_s28, 4  ;;  %v1167_v4 = vld [vmem:[%s1368_s2] sm:$0xff]  ;;  %v209_v6 = vld [vmem:[%s1369_s3 + $0x8] sm:$0xff]  ;;  %v1202_v21 = vld [vmem:[%s1368_s2 + $0x10] sm:$0xff]  ;;  %vm374_vm2 = vcmask 523264   ;;  %s1019_s16 = scalar_lea.hbm %s1018_s15, 32 }
  0x17   : > { %216 = vperm.xlu0 %965, %v208_v0   ;;  %s1154_s8 = scalar_lea.vmem %s1367_s1, %s914_s5  ;;  %v1211_v23 = vld [vmem:[%s1368_s2 + $0x18] sm:$0xff]  ;;  %v210_v57 = vld [vmem:[%s1369_s3 + $0x10] sm:$0xff]  ;;  %s203_s5 = sld [smem:[#allocation2]] }
  0x18   : > { %v1157_v2 = vld [vmem:[%s1154_s8 + $0x8] sm:$0xff]  ;;  %v1160_v3 = vld [vmem:[%s1154_s8] sm:$0xff]  ;;  %v211_v32 = vld [vmem:[%s1369_s3 + $0x18] sm:$0xff]  ;;  %p1020_p11 = scmp.ne.s32.totalorder %s1018_s15, %s1019_s16  ;;  %p1025_p1 = scmp.lt.s32.totalorder %s1023_s24, %s1019_s16 }
  0x19   : > { %261 = vmatpush.msra.mxu0 %v1157_v2  ;;  %917 = vmatpush.msra.mxu1 %v1157_v2 }
  0x1a   : > { %918 = vmatpush.msra.mxu2 %v1157_v2  ;;  %p1021_p12 = pnand %p1020_p11, %p1137_p5  ;;  %p1026_p2 = por %p1025_p1, %p1024_p0 }
  0x1b   : > { %262 = vmatpush.msra.mxu0 %v1160_v3  ;;  %919 = vmatpush.msra.mxu1 %v1160_v3 }
  0x1c   : > { %858 = vmatmul.msk.f32.vlgmr.msra.gmra.mxu0 %vm234_vm0, %v1167_v4  ;;  %859 = vmatmul.msk.f32.vlgmr.msra.gmra.mxu1 %vm234_vm0, %v1172_v5  ;;  %p1022_p13 = pneg %p1021_p12 }
  0x1d   : > { %920 = vmatpush.msra.mxu2 %v1160_v3 }
  0x1e   : > { %860 = vmatmul.msk.f32.vlgmr.msra.gmra.mxu2 %vm234_vm0, %v1202_v21  ;;  %p1027_p3 = pnand %p1026_p2, %p1022_p13 }
  0x1f   : > { %221 = vperm.xlu0 %965, %v209_v6  }
  0x26   : > { %861 = vmatmul.msk.f32.gmra.mxu2 %vm234_vm0, %v1211_v23 }
  0x89   : > { %v1185_v7 = vpop.permute.xlu0 %216 }
  0x91   : > { %v1187_v8 = vpop.permute.xlu0 %221 }
  0x99   : > { %v264_v9 = vpop.f32.mrf.mxu0  ;;  %v267_v10 = vpop.f32.mrf.mxu1 }
  0x9a   : > { %v268_v11 = vadd.f32 %v267_v10, %v1187_v8  ;;  %v265_v12 = vadd.f32 %v264_v9, %v1185_v7 }
  0x9c   : > { %348 = vmatpush.msrb.mxu1 %v268_v11  ;;  %276 = vxpose.xlu1.b32.start.end [1/1] (short) (narrow) %v265_v12, 64 }
 0x140   : > { %v292_v13 = vpop.trf.xlu1 }
 0x141   : > { %862 = vmatmul.msk.f32.vlgmr.msrb.gmra.mxu1 %vm308_vm1, %v292_v13 }
 0x148   : > { %v293_v14 = vpop.trf.xlu1 }
 0x149   : > { %863 = vmatmul.msk.f32.gmra.mxu1 %vm308_vm1, %v293_v14 }
 0x150   : > { %v294_v15 = vpop.trf.xlu1 }
 0x151   : > { %864 = vmatmul.msk.f32.gmra.mxu1 %vm308_vm1, %v294_v15  ;;  %v1068_v15 = vmov 1.0  }
 0x158   : > { %v295_v16 = vpop.trf.xlu1 }
 0x159   : > { %865 = vmatmul.msk.f32.gmra.mxu1 %vm308_vm1, %v295_v16  ;;  %v1246_v16 = vld [vmem:[%s1154_s8 + $0x18] sm:$0xff] }
 0x160   : > { %v296_v17 = vpop.trf.xlu1 }
 0x161   : > { %866 = vmatmul.msk.f32.gmra.mxu1 %vm308_vm1, %v296_v17  ;;  %v270_v17 = vpop.f32.mrf.mxu2 }
 0x168   : > { %v297_v18 = vpop.trf.xlu1 }
 0x169   : > { %867 = vmatmul.msk.f32.gmra.mxu1 %vm308_vm1, %v297_v18  ;;  %v1250_v18 = vld [vmem:[%s1154_s8 + $0x10] sm:$0xff]  ;;  %s1276_s8 = scalar_lea.vmem [#allocation3], %s854_s7 }
 0x16a   : > { %s785_s13 = sshll.u32 %s1276_s8, 4  ;;  %s786_s13 = int_to_ptr.vmem [resolvable:$true] %s785_s13 }
 0x170   : > { %v298_v19 = vpop.trf.xlu1 }
 0x171   : > { %868 = vmatmul.msk.f32.gmra.mxu1 %vm308_vm1, %v298_v19  ;;  %v273_v19 = vpop.f32.mrf.mxu2 }
 0x178   : > { %v299_v20 = vpop.trf.xlu1 }
 0x179   : > { %869 = vmatmul.msk.f32.gmra.mxu1 %vm308_vm1, %v299_v20 }
 0x1be   : > { %v1206_v22 = vpop.f32.mrf.mxu1 }
 0x1bf   : > { %v375_v39 = vsel %vm374_vm2, %v1206_v22, -inf }
 0x1c6   : > { %v1215_v24 = vpop.f32.mrf.mxu1 }
 0x1c7   : > { %v378_v38 = vsel %vm374_vm2, %v1215_v24, -inf }
 0x1ce   : > { %v356_v25 = vpop.f32.mrf.mxu1 }
 0x1cf   : > { %v381_v37 = vsel %vm374_vm2, %v356_v25, -inf }
 0x1d6   : > { %v359_v26 = vpop.f32.mrf.mxu1 }
 0x1d7   : > { %v384_v36 = vsel %vm374_vm2, %v359_v26, -inf }
 0x1de   : > { %v362_v27 = vpop.f32.mrf.mxu1 }
 0x1df   : > { %v387_v28 = vsel %vm374_vm2, %v362_v27, -inf }
 0x1e0   : > { %388 = vmax.xlane.f32.xlu0 %v387_v28 }
 0x1e6   : > { %v365_v29 = vpop.f32.mrf.mxu1 }
 0x1e7   : > { %v390_v34 = vsel %vm374_vm2, %v365_v29, -inf }
 0x1ee   : > { %v368_v30 = vpop.f32.mrf.mxu1 }
 0x1ef   : > { %v393_v31 = vsel %vm374_vm2, %v368_v30, -inf }
 0x1f0   : > { %394 = vmax.xlane.f32.xlu2 %v393_v31  ;;  %v1270_v31 = vstv %s203_s5 }
 0x1f4   : > { %231 = vperm.xlu0 %965, %v211_v32  }
 0x1f6   : > { %v371_v33 = vpop.f32.mrf.mxu1 }
 0x1f7   : > { %v396_v35 = vsel %vm374_vm2, %v371_v33, -inf }
 0x1f8   : > { %391 = vmax.xlane.f32.xlu2 %v390_v34  ;;  %397 = vmax.xlane.f32.xlu1 %v396_v35 }
 0x200   : > { %385 = vmax.xlane.f32.xlu2 %v384_v36 }
 0x208   : > { %382 = vmax.xlane.f32.xlu2 %v381_v37 }
 0x210   : > { %379 = vmax.xlane.f32.xlu2 %v378_v38 }
 0x218   : > { %376 = vmax.xlane.f32.xlu2 %v375_v39 }
 0x230   : > { %226 = vperm.xlu2 %966, %v210_v57  }
 0x253   : > { %v389_v44 = vpop.xlane.xlu0 %388 }
 0x254   : > { %v403_v48 = vsub.f32 %v362_v27, %v389_v44 }
 0x256   : > { %v415_v51 = vmul.f32 1.442695, %v403_v48 }
 0x263   : > { %v395_v40 = vpop.xlane.xlu2 %394 }
 0x264   : > { %v405_v41 = vsub.f32 %v368_v30, %v395_v40 }
 0x266   : > { %v419_v49 = vmul.f32 1.442695, %v405_v41  ;;  %v1257_v28 = vpop.permute.xlu0 %231 }
 0x26b   : > { %v392_v42 = vpop.xlane.xlu2 %391  ;;  %v398_v43 = vpop.xlane.xlu1 %397 }
 0x26c   : > { %v406_v45 = vsub.f32 %v371_v33, %v398_v43  ;;  %v404_v46 = vsub.f32 %v365_v29, %v392_v42  ;;  %v274_v29 = vadd.f32 %v273_v19, %v1257_v28 }
 0x26e   : > { %v421_v47 = vmul.f32 1.442695, %v406_v45  ;;  %v417_v50 = vmul.f32 1.442695, %v404_v46 }
 0x270   : > { %967 = vpow2.f32 %v421_v47 }
 0x271   : > { %969 = vpow2.f32 %v419_v49 }
 0x272   : > { %971 = vpow2.f32 %v417_v50 }
 0x273   : > { %v386_v52 = vpop.xlane.xlu2 %385  ;;  %973 = vpow2.f32 %v415_v51 }
 0x274   : > { %v402_v53 = vsub.f32 %v359_v26, %v386_v52 }
 0x276   : > { %v413_v54 = vmul.f32 1.442695, %v402_v53  ;;  %v968_v55 = vpop.eup %967 }
 0x277   : > { %870 = vmatpush.xpose.msk.msrb.mxu2 %vm374_vm2, %v968_v55  ;;  %488 = vmatpush.msra.mxu3 %v968_v55  ;;  %v970_v56 = vpop.eup %969 }
 0x278   : > { %975 = vpow2.f32 %v413_v54  ;;  %v972_v58 = vpop.eup %971 }
 0x279   : > { %489 = vmatpush.msra.mxu3 %v970_v56  ;;  %v974_v61 = vpop.eup %973 }
 0x27b   : > { %v383_v59 = vpop.xlane.xlu2 %382  ;;  %871 = vmatpush.xpose.msk.msrb.mxu2 %vm374_vm2, %v970_v56  ;;  %490 = vmatpush.msra.mxu3 %v972_v58 }
 0x27c   : > { %v401_v60 = vsub.f32 %v356_v25, %v383_v59 }
 0x27d   : > { %491 = vmatpush.msra.mxu3 %v974_v61 }
 0x27e   : > { %v976_v62 = vpop.eup %975  ;;  %v411_v63 = vmul.f32 1.442695, %v401_v60 }
 0x27f   : > { %872 = vmatpush.xpose.msk.msrb.mxu2 %vm374_vm2, %v972_v58  ;;  %492 = vmatpush.msra.mxu3 %v976_v62 }
 0x280   : > { %977 = vpow2.f32 %v411_v63 }
 0x283   : > { %v380_v0 = vpop.xlane.xlu2 %379  ;;  %873 = vmatpush.xpose.msk.msrb.mxu2 %vm374_vm2, %v974_v61 }
 0x284   : > { %v400_v1 = vsub.f32 %v1215_v24, %v380_v0 }
 0x286   : > { %v978_v6 = vpop.eup %977  ;;  %v409_v9 = vmul.f32 1.442695, %v400_v1 }
 0x287   : > { %493 = vmatpush.msra.mxu3 %v978_v6  ;;  %874 = vmatpush.xpose.msk.msrb.mxu2 %vm374_vm2, %v976_v62 }
 0x288   : > { %979 = vpow2.f32 %v409_v9 }
 0x28b   : > { %v377_v10 = vpop.xlane.xlu2 %376  ;;  %875 = vmatpush.xpose.msk.msrb.mxu2 %vm374_vm2, %v978_v6 }
 0x28c   : > { %v399_v11 = vsub.f32 %v1206_v22, %v377_v10 }
 0x28e   : > { %v980_v12 = vpop.eup %979  ;;  %v407_v13 = vmul.f32 1.442695, %v399_v11 }
 0x28f   : > { %494 = vmatpush.msra.mxu3 %v980_v12  ;;  %876 = vmatpush.xpose.msk.msrb.mxu2 %vm374_vm2, %v980_v12 }
 0x290   : > { %981 = vpow2.f32 %v407_v13 }
 0x293   : > { %v1253_v22 = vpop.permute.xlu2 %226 }
 0x294   : > { %v271_v25 = vadd.f32 %v270_v17, %v1253_v22 }
 0x296   : > { %v982_v14 = vpop.eup %981 }
 0x297   : > { %877 = vmatpush.xpose.msk.msrb.mxu2 %vm374_vm2, %v982_v14  ;;  %495 = vmatpush.msra.mxu3 %v982_v14 }
 0x299   : > { %527 = vmatpush.msrb.mxu3 %v1246_v16 }
 0x29a   : > { %878 = vmatmul.msk.f32.vlgmr.msrb.gmra.mxu2 %vm374_vm2, %v1068_v15 }
 0x29b   : > { %528 = vmatpush.msrb.mxu3 %v1250_v18 }
 0x31d   : > { %v467_v20 = vpop.f32.mrf.mxu2 }
 0x31e   : > { %983 = vrcp.f32 %v467_v20 }
 0x324   : > { %v984_v24 = vpop.eup %983 }
 0x325   : > { %v471_v26 = vperm.slane %v984_v24, 0 }
 0x327   : > { %v472_v27 = vmul.f32 %v471_v26, %v271_v25  ;;  %v473_v30 = vmul.f32 %v471_v26, %v274_v29 }
 0x329   : > { %879 = vmatmul.msk.f32.vlgmr.msra.gmra.mxu3 %vm374_vm2, %v472_v27 }
 0x331   : > { %880 = vmatmul.msk.f32.gmra.mxu3 %vm374_vm2, %v473_v30 }
 0x339   : > { %883 = vmatmul.msk.f32.vlgmr.msrb.gmra.mxu3 %vm234_vm0, %v1167_v4 }
 0x341   : > { %884 = vmatmul.msk.f32.gmra.mxu3 %vm234_vm0, %v1172_v5 }
 0x349   : > { %885 = vmatmul.msk.f32.gmra.mxu3 %vm234_vm0, %v1202_v21 }
 0x351   : > { %886 = vmatmul.msk.f32.gmra.mxu3 %vm234_vm0, %v1211_v23 }
 0x3ac   : > { %v497_v32 = vpop.f32.mrf.mxu3 }
 0x3ad   : > { %v504_v33 = vmul.f32 %v1270_v31, %v497_v32 }
 0x3af   : > { %v506_v4 = vadd.f32 %v504_v33, %v1160_v3 }
 0x3b1   : > { %508 = vst.msk [vmem:[%s1276_s8] sm:$0xff] %vm374_vm2, %v506_v4 }
 0x3b4   : > { %v500_v5 = vpop.f32.mrf.mxu3 }
 0x3b5   : > { %v505_v21 = vmul.f32 %v1270_v31, %v500_v5 }
 0x3b7   : > { %v507_v23 = vadd.f32 %v505_v21, %v1157_v2 }
 0x3b9   : > { %509 = vst.msk [vmem:[%s1276_s8 + $0x8] sm:$0xff] %vm374_vm2, %v507_v23 }
 0x3bc   : > { %v530_v34 = vpop.f32.mrf.mxu3 }
 0x3bd   : > { %v531_v35 = vadd.f32 %v530_v34, %v1185_v7 }
 0x3bf   : > { %542 = vxpose.xlu2.b32.start.end [1/1] (short) (narrow) %v531_v35, 64 }
 0x3c4   : > { %v533_v36 = vpop.f32.mrf.mxu3 }
 0x3c5   : > { %v534_v3 = vadd.f32 %v533_v36, %v1187_v8 }
 0x3c7   : > { %613 = vmatpush.msrb.mxu0 %v534_v3 }
 0x3cc   : > { %v536_v3 = vpop.f32.mrf.mxu3 }
 0x458   : > { %v558_v37 = vpop.trf.xlu2 }
 0x459   : > { %887 = vmatmul.msk.f32.vlgmr.msrb.gmra.mxu0 %vm308_vm1, %v558_v37 }
 0x460   : > { %v559_v38 = vpop.trf.xlu2 }
 0x461   : > { %888 = vmatmul.msk.f32.gmra.mxu0 %vm308_vm1, %v559_v38  ;;  %v537_v38 = vadd.f32 %v536_v3, %v1253_v22 }
 0x468   : > { %v560_v39 = vpop.trf.xlu2 }
 0x469   : > { %889 = vmatmul.msk.f32.gmra.mxu0 %vm308_vm1, %v560_v39 }
 0x470   : > { %v561_v2 = vpop.trf.xlu2 }
 0x471   : > { %890 = vmatmul.msk.f32.gmra.mxu0 %vm308_vm1, %v561_v2 }
 0x478   : > { %v562_v40 = vpop.trf.xlu2 }
 0x479   : > { %891 = vmatmul.msk.f32.gmra.mxu0 %vm308_vm1, %v562_v40  ;;  %v539_v40 = vpop.f32.mrf.mxu3 }
 0x480   : > { %v563_v7 = vpop.trf.xlu2 }
 0x481   : > { %892 = vmatmul.msk.f32.gmra.mxu0 %vm308_vm1, %v563_v7  ;;  %v540_v7 = vadd.f32 %v539_v40, %v1257_v28 }
 0x488   : > { %v564_v8 = vpop.trf.xlu2 }
 0x489   : > { %893 = vmatmul.msk.f32.gmra.mxu0 %vm308_vm1, %v564_v8 }
 0x490   : > { %v565_v41 = vpop.trf.xlu2 }
 0x491   : > { %894 = vmatmul.msk.f32.gmra.mxu0 %vm308_vm1, %v565_v41 }
 0x4d6   : > { %v1294_v42 = vpop.f32.mrf.mxu0 }
 0x4d7   : > { %v639_v57 = vsel %vm374_vm2, %v1294_v42, -inf }
 0x4de   : > { %v1296_v43 = vpop.f32.mrf.mxu0 }
 0x4df   : > { %v642_v56 = vsel %vm374_vm2, %v1296_v43, -inf }
 0x4e6   : > { %v621_v44 = vpop.f32.mrf.mxu0 }
 0x4e7   : > { %v645_v55 = vsel %vm374_vm2, %v621_v44, -inf }
 0x4ee   : > { %v624_v45 = vpop.f32.mrf.mxu0 }
 0x4ef   : > { %v648_v54 = vsel %vm374_vm2, %v624_v45, -inf }
 0x4f6   : > { %v627_v46 = vpop.f32.mrf.mxu0 }
 0x4f7   : > { %v651_v50 = vsel %vm374_vm2, %v627_v46, -inf }
 0x4fe   : > { %v630_v47 = vpop.f32.mrf.mxu0 }
 0x4ff   : > { %v654_v48 = vsel %vm374_vm2, %v630_v47, -inf }
 0x500   : > { %655 = vmax.xlane.f32.xlu0 %v654_v48 }
 0x506   : > { %v633_v49 = vpop.f32.mrf.mxu0 }
 0x507   : > { %v657_v51 = vsel %vm374_vm2, %v633_v49, -inf }
 0x508   : > { %652 = vmax.xlane.f32.xlu0 %v651_v50  ;;  %658 = vmax.xlane.f32.xlu2 %v657_v51 }
 0x50e   : > { %v636_v52 = vpop.f32.mrf.mxu0 }
 0x50f   : > { %v660_v53 = vsel %vm374_vm2, %v636_v52, -inf }
 0x510   : > { %661 = vmax.xlane.f32.xlu0 %v660_v53 }
 0x518   : > { %649 = vmax.xlane.f32.xlu0 %v648_v54 }
 0x520   : > { %646 = vmax.xlane.f32.xlu0 %v645_v55 }
 0x528   : > { %643 = vmax.xlane.f32.xlu0 %v642_v56 }
 0x530   : > { %640 = vmax.xlane.f32.xlu0 %v639_v57 }
 0x573   : > { %v656_v58 = vpop.xlane.xlu0 %655 }
 0x574   : > { %v668_v63 = vsub.f32 %v630_v47, %v656_v58 }
 0x576   : > { %v681_v10 = vmul.f32 1.442695, %v668_v63 }
 0x57b   : > { %v653_v59 = vpop.xlane.xlu0 %652  ;;  %v659_v60 = vpop.xlane.xlu2 %658 }
 0x57c   : > { %v669_v61 = vsub.f32 %v633_v49, %v659_v60  ;;  %v667_v1 = vsub.f32 %v627_v46, %v653_v59 }
 0x57e   : > { %v683_v6 = vmul.f32 1.442695, %v669_v61  ;;  %v679_v11 = vmul.f32 1.442695, %v667_v1 }
 0x583   : > { %v662_v62 = vpop.xlane.xlu0 %661 }
 0x584   : > { %v670_v0 = vsub.f32 %v636_v52, %v662_v62 }
 0x586   : > { %v685_v9 = vmul.f32 1.442695, %v670_v0 }
 0x588   : > { %985 = vpow2.f32 %v685_v9 }
 0x589   : > { %987 = vpow2.f32 %v683_v6 }
 0x58a   : > { %989 = vpow2.f32 %v681_v10 }
 0x58b   : > { %v650_v12 = vpop.xlane.xlu0 %649  ;;  %991 = vpow2.f32 %v679_v11 }
 0x58c   : > { %v666_v13 = vsub.f32 %v624_v45, %v650_v12 }
 0x58e   : > { %v986_v14 = vpop.eup %985  ;;  %v677_v17 = vmul.f32 1.442695, %v666_v13 }
 0x58f   : > { %895 = vmatpush.xpose.msk.msra.mxu2 %vm374_vm2, %v986_v14  ;;  %749 = vmatpush.msra.mxu3 %v986_v14  ;;  %v988_v19 = vpop.eup %987 }
 0x590   : > { %993 = vpow2.f32 %v677_v17  ;;  %v990_v20 = vpop.eup %989 }
 0x591   : > { %750 = vmatpush.msra.mxu3 %v988_v19  ;;  %v992_v25 = vpop.eup %991 }
 0x593   : > { %v647_v24 = vpop.xlane.xlu0 %646  ;;  %896 = vmatpush.xpose.msk.msra.mxu2 %vm374_vm2, %v988_v19  ;;  %751 = vmatpush.msra.mxu3 %v990_v20 }
 0x594   : > { %v665_v26 = vsub.f32 %v621_v44, %v647_v24 }
 0x595   : > { %752 = vmatpush.msra.mxu3 %v992_v25 }
 0x596   : > { %v994_v27 = vpop.eup %993  ;;  %v675_v29 = vmul.f32 1.442695, %v665_v26 }
 0x597   : > { %897 = vmatpush.xpose.msk.msra.mxu2 %vm374_vm2, %v990_v20  ;;  %753 = vmatpush.msra.mxu3 %v994_v27 }
 0x598   : > { %995 = vpow2.f32 %v675_v29 }
 0x59b   : > { %v644_v30 = vpop.xlane.xlu0 %643  ;;  %898 = vmatpush.xpose.msk.msra.mxu2 %vm374_vm2, %v992_v25 }
 0x59c   : > { %v664_v32 = vsub.f32 %v1296_v43, %v644_v30 }
 0x59e   : > { %v996_v33 = vpop.eup %995  ;;  %v673_v4 = vmul.f32 1.442695, %v664_v32 }
 0x59f   : > { %899 = vmatpush.xpose.msk.msra.mxu2 %vm374_vm2, %v994_v27  ;;  %754 = vmatpush.msra.mxu3 %v996_v33 }
 0x5a0   : > { %997 = vpow2.f32 %v673_v4 }
 0x5a3   : > { %v641_v5 = vpop.xlane.xlu0 %640  ;;  %900 = vmatpush.xpose.msk.msra.mxu2 %vm374_vm2, %v996_v33 }
 0x5a4   : > { %v663_v21 = vsub.f32 %v1294_v42, %v641_v5 }
 0x5a6   : > { %v998_v23 = vpop.eup %997  ;;  %v671_v34 = vmul.f32 1.442695, %v663_v21 }
 0x5a7   : > { %901 = vmatpush.xpose.msk.msra.mxu2 %vm374_vm2, %v998_v23  ;;  %755 = vmatpush.msra.mxu3 %v998_v23 }
 0x5a8   : > { %999 = vpow2.f32 %v671_v34 }
 0x5ae   : > { %v1000_v35 = vpop.eup %999 }
 0x5af   : > { %902 = vmatpush.xpose.msk.msra.mxu2 %vm374_vm2, %v1000_v35  ;;  %756 = vmatpush.msra.mxu3 %v1000_v35 }
 0x5b2   : > { %903 = vmatmul.msk.f32.vlgmr.msra.gmra.mxu2 %vm374_vm2, %v1068_v15 }
 0x635   : > { %v728_v36 = vpop.f32.mrf.mxu2 }
 0x636   : > { %1001 = vrcp.f32 %v728_v36 }
 0x63c   : > { %v1002_v37 = vpop.eup %1001 }
 0x63d   : > { %v732_v39 = vperm.slane %v1002_v37, 0 }
 0x63f   : > { %v733_v2 = vmul.f32 %v732_v39, %v537_v38  ;;  %v734_v8 = vmul.f32 %v732_v39, %v540_v7 }
 0x641   : > { %904 = vmatmul.msk.f32.vlgmr.msra.gmra.mxu3 %vm374_vm2, %v733_v2 }
 0x649   : > { %905 = vmatmul.msk.f32.gmra.mxu3 %vm374_vm2, %v734_v8 }
 0x6c4   : > { %v758_v15 = vpop.f32.mrf.mxu3 }
 0x6c5   : > { %v764_v41 = vmul.f32 %v758_v15, %v1270_v31 }
 0x6c7   : > { %v766_v42 = vadd.f32 %v1250_v18, %v764_v41 }
 0x6c9   : > { %906 = vst.msk [vmem:[%s1276_s8 + $0x10] sm:$0xff] %vm374_vm2, %v766_v42 }
 0x6cc   : > { %v761_v22 = vpop.f32.mrf.mxu3 }
 0x6cd   : > { %v765_v28 = vmul.f32 %v761_v22, %v1270_v31 }
 0x6cf   : > { %v767_v43 = vadd.f32 %v1246_v16, %v765_v28 }
 0x6d1   : > { %907 = vst.msk [vmem:[%s1276_s8 + $0x18] sm:$0xff] %vm374_vm2, %v767_v43 }
 0x6d2   : > { %1030 = shalt.err (!%p1027_p3)
}
 0x6d3   : > { %s1069_s30 = smov 128   ;;  %s1070_s5 = smov 8  }
 0x6d4   : > { %921 = dma.vmem_to_hbm [thread:$0]  (%p1137_p5), %s786_s13, 512, %s788_s14, %s772_s0, %s1069_s30, %s1069_s30, %s1070_s5  }
 0x6d5 PF: > { %p927_p4 = scmp.ge.s32.totalorder %s1065_s20, 2  ;;  %s802_s6 = sand.u32 1, %s1053_s17  }
 0x6d6   : > { %s803_s7 = scalar_lea.sflag [#allocation4], %s802_s6 }
 0x6d7   : > { %p924_p7 = pnand %p927_p4, %p1141_p6 }
 0x6d9   : > { %p925_p8 = pneg %p924_p7 }
 0x6db   : > { %1048 = dma.done.wait (%p925_p8), %s803_s7, 512  }
 0x6dc   : > { %1050 = vsyncadd (%p925_p8), %s803_s7, 4294966784  ;;  %p15_p9 = scmp.ge.s32.totalorder %s1124_s22, 4   ;;  %s1373_s17 = smov %s1057_s18 }
 0x6dd   : > { %s1374_s18 = smov %s1061_s19  ;;  %s1375_s19 = smov %s1135_s25 }
 0x6de   : > { %s1376_s20 = smov %s1124_s22  ;;  %17 = sbr.rel (!%p15_p9) target bundleno = 5 (0x5), region = 73 }
 0x6e3   :  { %809 = vsyncpa [#allocation4], 1 }
 0x6e4   :  { %811 = vsyncpa [#allocation4 + $0x1], 1 }

</bundles_post_ra>
